<compile_context>
chip_gen: v5e
topology: v5e:2x2
jax: 0.10.0
libtpu: 0.0.40
codegen_flags: <defaults>
</compile_context>

<pallas_src>
import functools

import jax
import jax.numpy as jnp
from jax.experimental import pallas as pl
from jax.experimental.pallas import tpu as pltpu


def _round_up(x, m):
    return ((x + m - 1) // m) * m


# ----------------------------- Pallas kernel --------------------------------

def _edge_model_kernel(slope_ref,                   # SMEM (1,)      f32
                       src_ref, dst_ref, e_ref,     # VMEM (bm, H)   in dtype
                       w1_ref,                      # VMEM (3H, 2H)  compute dtype
                       b1_ref, g_ref, beta_ref,     # VMEM (1, 2H)   f32
                       w2_ref, b2_ref,              # VMEM (2H, H) cd / (1, H) f32
                       o_ref,                       # VMEM (bm, H)   out dtype
                       *scratch,
                       compute_dtype, n_hidden, fuse_concat):
    H = n_hidden
    cd = compute_dtype

    if fuse_concat:
        # Single K=3H matmul: build the concat in a VMEM scratch (slice stores
        # are lane-aligned because H % 128 == 0), then one MXU pass.
        x_scr, = scratch
        x_scr[:, 0:H] = src_ref[...].astype(cd)
        x_scr[:, H:2 * H] = dst_ref[...].astype(cd)
        x_scr[:, 2 * H:3 * H] = e_ref[...].astype(cd)
        h = jnp.dot(x_scr[...], w1_ref[...], preferred_element_type=jnp.float32)
    else:
        # Fallback for H % 128 != 0: three partial matmuls accumulate into the
        # same f32 registers; W1 row-block views are sublane-aligned slices.
        h = jnp.dot(src_ref[...].astype(cd), w1_ref[0:H, :],
                    preferred_element_type=jnp.float32)
        h += jnp.dot(dst_ref[...].astype(cd), w1_ref[H:2 * H, :],
                     preferred_element_type=jnp.float32)
        h += jnp.dot(e_ref[...].astype(cd), w1_ref[2 * H:3 * H, :],
                     preferred_element_type=jnp.float32)
    h += b1_ref[...]

    # LayerNorm(2H): biased variance, eps=1e-5 inside the rsqrt so degenerate
    # (e.g. all-zero) rows stay finite.  f32 VPU/EUP math (v5e-safe).
    mean = jnp.mean(h, axis=-1, keepdims=True)
    var = jnp.mean((h - mean) ** 2, axis=-1, keepdims=True)
    h = (h - mean) * jax.lax.rsqrt(var + 1e-5)
    h = h * g_ref[...] + beta_ref[...]

    # PReLU with a single learned slope, read off the scalar (SMEM) path.
    a = slope_ref[0]
    h = jnp.maximum(h, 0.0) + a * jnp.minimum(h, 0.0)

    # Linear(2H -> H)
    out = jnp.dot(h.astype(cd), w2_ref[...],
                  preferred_element_type=jnp.float32) + b2_ref[...]
    o_ref[...] = out.astype(o_ref.dtype)


# ------------------------------- wrapper -------------------------------------

def edge_model_forward(src, dest, edge_attr, params, *,
                       row_tile=2048, use_bf16=True, out_dtype=None):
    """Pallas forward of EdgeModel: edge_mlp(cat([src, dest, edge_attr], 1)).

    src/dest/edge_attr may be f32 or bf16; they are consumed directly (no
    wrapper-side cast/pad/slice passes over HBM).  Matmuls run on the MXU in
    bf16 with f32 accumulation when use_bf16=True (~1e-2-level error vs a
    float32 reference); LayerNorm/PReLU stay in f32.
    """
    E, H = src.shape
    assert dest.shape == (E, H) and edge_attr.shape == (E, H)
    H2 = 2 * H
    cd = jnp.bfloat16 if use_bf16 else jnp.float32
    out_dtype = src.dtype if out_dtype is None else out_dtype

    # Tiny parameter tensors: pre-cast matmul weights to the MXU dtype once.
    w1 = params["w1"].astype(cd)                                  # (3H, 2H)
    w2 = params["w2"].astype(cd)                                  # (2H, H)
    b1 = params["b1"].reshape(1, H2).astype(jnp.float32)
    gamma = params["ln_g"].reshape(1, H2).astype(jnp.float32)
    beta = params["ln_b"].reshape(1, H2).astype(jnp.float32)
    b2 = params["b2"].reshape(1, H).astype(jnp.float32)
    slope = jnp.asarray(params["prelu"], jnp.float32).reshape(1)

    # Row (edge) tiling.  No wrapper pad / output slice: grid = cdiv(E, bm) and
    # the ragged final block is masked by Pallas.  bm is capped at ~half the
    # rows so the grid has >= 2 steps whenever possible (v7x: both TCs busy).
    E8 = _round_up(E, 8)
    bm = max(8, min(row_tile, _round_up(pl.cdiv(E8, 2), 8)))
    grid = (pl.cdiv(E, bm),)

    fuse_concat = (H % 128 == 0)
    scratch_shapes = [pltpu.VMEM((bm, 3 * H), cd)] if fuse_concat else []

    row_spec = pl.BlockSpec((bm, H), lambda i: (i, 0))
    full = lambda shape: pl.BlockSpec(shape, lambda i: (0, 0))

    in_bytes = jnp.dtype(src.dtype).itemsize
    cost = pl.CostEstimate(
        flops=16 * E * H * H,                       # 2*E*(3H*2H + 2H*H)
        transcendentals=E,                          # rsqrt per row
        bytes_accessed=(3 * E * H * in_bytes
                        + E * H * jnp.dtype(out_dtype).itemsize
                        + (3 * H * H2 + H2 * H) * jnp.dtype(cd).itemsize
                        + (3 * H2 + H) * 4),
    )

    out = pl.pallas_call(
        functools.partial(_edge_model_kernel, compute_dtype=cd,
                          n_hidden=H, fuse_concat=fuse_concat),
        grid=grid,
        in_specs=[
            pl.BlockSpec(memory_space=pltpu.MemorySpace.SMEM),   # PReLU slope
            row_spec, row_spec, row_spec,                        # src, dest, edge
            full((3 * H, H2)),                                   # W1 (whole)
            full((1, H2)), full((1, H2)), full((1, H2)),         # b1, gamma, beta
            full((H2, H)), full((1, H)),                         # W2, b2
        ],
        out_specs=pl.BlockSpec((bm, H), lambda i: (i, 0)),
        out_shape=jax.ShapeDtypeStruct((E, H), out_dtype),
        scratch_shapes=scratch_shapes,
        compiler_params=pltpu.CompilerParams(
            dimension_semantics=("parallel",)),                  # v7x: 2 TCs
        cost_estimate=cost,
    )(slope, src, dest, edge_attr, w1, b1, gamma, beta, w2, b2)

    return out


# --------------------------- parameter init ----------------------------------

def init_params(key, n_hidden):
    H = n_hidden
    k1, k2, k3, k4 = jax.random.split(key, 4)
    bound1 = 1.0 / (3 * H) ** 0.5
    w1 = jax.random.uniform(k1, (3 * H, 2 * H), jnp.float32, -bound1, bound1)
    b1 = jax.random.uniform(k2, (2 * H,), jnp.float32, -bound1, bound1)
    bound2 = 1.0 / (2 * H) ** 0.5
    w2 = jax.random.uniform(k3, (2 * H, H), jnp.float32, -bound2, bound2)
    b2 = jax.random.uniform(k4, (H,), jnp.float32, -bound2, bound2)
    return {
        "w1": w1, "b1": b1,
        "ln_g": jnp.ones((2 * H,), jnp.float32),
        "ln_b": jnp.zeros((2 * H,), jnp.float32),
        "prelu": 0.25,                 # nn.PReLU() default init
        "w2": w2, "b2": b2,
    }


# --------------------------------- main ---------------------------------------

if __name__ == "__main__":
    n_hidden = 128     # 3H=384 -> lane-aligned in-kernel concat; H=128 output lane-dense
    n_edges = 20       # not a multiple of the row tile -> exercises the masked tail

    key = jax.random.PRNGKey(0)
    kp, ks, kd, ke = jax.random.split(key, 4)
    params = init_params(kp, n_hidden)

    src = jax.random.normal(ks, (n_edges, n_hidden), jnp.float32)
    dest = jax.random.normal(kd, (n_edges, n_hidden), jnp.float32)
    edge_attr = jax.random.normal(ke, (n_edges, n_hidden), jnp.float32)

    out = edge_model_forward(src, dest, edge_attr, params)
    jax.block_until_ready(out)
    assert out.shape == (n_edges, n_hidden)
    assert bool(jnp.all(jnp.isfinite(out)))

    # Pure-JAX f32 reference.  The kernel uses bf16 MXU operands with f32
    # accumulation, so expect ~1e-2-level differences vs a float32 reference.
    ref_h = jnp.concatenate([src, dest, edge_attr], axis=1) @ params["w1"] + params["b1"]
    mean = ref_h.mean(-1, keepdims=True)
    var = ((ref_h - mean) ** 2).mean(-1, keepdims=True)
    ref_h = (ref_h - mean) * jax.lax.rsqrt(var + 1e-5)
    ref_h = ref_h * params["ln_g"] + params["ln_b"]
    ref_h = jnp.maximum(ref_h, 0.0) + params["prelu"] * jnp.minimum(ref_h, 0.0)
    ref = ref_h @ params["w2"] + params["b2"]
    assert float(jnp.max(jnp.abs(out - ref))) < 1e-1

    print("KERNEL_OK")
</pallas_src>

<mosaic_0001>
module attributes {stable_mosaic.version = 11 : i64} {
  func.func @_edge_model_kernel(%arg0: i32, %arg1: memref<1xf32, #tpu.memory_space<smem>>, %arg2: memref<16x128xf32, #tpu.memory_space<vmem>>, %arg3: memref<16x128xf32, #tpu.memory_space<vmem>>, %arg4: memref<16x128xf32, #tpu.memory_space<vmem>>, %arg5: memref<384x256xbf16, #tpu.memory_space<vmem>>, %arg6: memref<1x256xf32, #tpu.memory_space<vmem>>, %arg7: memref<1x256xf32, #tpu.memory_space<vmem>>, %arg8: memref<1x256xf32, #tpu.memory_space<vmem>>, %arg9: memref<256x128xbf16, #tpu.memory_space<vmem>>, %arg10: memref<1x128xf32, #tpu.memory_space<vmem>>, %arg11: memref<16x128xf32, #tpu.memory_space<vmem>>, %arg12: memref<16x384xbf16, #tpu.memory_space<vmem>>) attributes {dimension_semantics = [#tpu.dimension_semantics<parallel>], iteration_bounds = array<i64: 2>, scalar_prefetch = 0 : i64, scratch_operands = 1 : i64, tpu.core_type = #tpu.core_type<tc>, window_params = [{transform_indices = @transform_0, window_bounds = array<i64: 1>}, {transform_indices = @transform_1, window_bounds = array<i64: 16, 128>}, {transform_indices = @transform_2, window_bounds = array<i64: 16, 128>}, {transform_indices = @transform_3, window_bounds = array<i64: 16, 128>}, {pipeline_mode = #tpu.pipeline_mode<synchronous>, transform_indices = @transform_4, window_bounds = array<i64: 384, 256>}, {pipeline_mode = #tpu.pipeline_mode<synchronous>, transform_indices = @transform_5, window_bounds = array<i64: 1, 256>}, {pipeline_mode = #tpu.pipeline_mode<synchronous>, transform_indices = @transform_6, window_bounds = array<i64: 1, 256>}, {pipeline_mode = #tpu.pipeline_mode<synchronous>, transform_indices = @transform_7, window_bounds = array<i64: 1, 256>}, {pipeline_mode = #tpu.pipeline_mode<synchronous>, transform_indices = @transform_8, window_bounds = array<i64: 256, 128>}, {pipeline_mode = #tpu.pipeline_mode<synchronous>, transform_indices = @transform_9, window_bounds = array<i64: 1, 128>}, {transform_indices = @transform_10, window_bounds = array<i64: 16, 128>}]} {
    %c0 = arith.constant 0 : index
    %c0_0 = arith.constant 0 : index
    %0 = vector.load %arg2[%c0, %c0_0] : memref<16x128xf32, #tpu.memory_space<vmem>>, vector<16x128xf32>
    %1 = arith.truncf %0 : vector<16x128xf32> to vector<16x128xbf16>
    %c0_1 = arith.constant 0 : index
    %c0_2 = arith.constant 0 : index
    %2 = vector.load %arg12[%c0_1, %c0_2] : memref<16x384xbf16, #tpu.memory_space<vmem>>, vector<16x128xbf16>
    tpu.vector_store %arg12[%c0_1, %c0_2], %1 {strides = array<i32>} : memref<16x384xbf16, #tpu.memory_space<vmem>>, vector<16x128xbf16>,
    %c0_3 = arith.constant 0 : index
    %c0_4 = arith.constant 0 : index
    %3 = vector.load %arg3[%c0_3, %c0_4] : memref<16x128xf32, #tpu.memory_space<vmem>>, vector<16x128xf32>
    %4 = arith.truncf %3 : vector<16x128xf32> to vector<16x128xbf16>
    %c0_5 = arith.constant 0 : index
    %c128 = arith.constant 128 : index
    %5 = vector.load %arg12[%c0_5, %c128] : memref<16x384xbf16, #tpu.memory_space<vmem>>, vector<16x128xbf16>
    tpu.vector_store %arg12[%c0_5, %c128], %4 {strides = array<i32>} : memref<16x384xbf16, #tpu.memory_space<vmem>>, vector<16x128xbf16>,
    %c0_6 = arith.constant 0 : index
    %c0_7 = arith.constant 0 : index
    %6 = vector.load %arg4[%c0_6, %c0_7] : memref<16x128xf32, #tpu.memory_space<vmem>>, vector<16x128xf32>
    %7 = arith.truncf %6 : vector<16x128xf32> to vector<16x128xbf16>
    %c0_8 = arith.constant 0 : index
    %c256 = arith.constant 256 : index
    %8 = vector.load %arg12[%c0_8, %c256] : memref<16x384xbf16, #tpu.memory_space<vmem>>, vector<16x128xbf16>
    tpu.vector_store %arg12[%c0_8, %c256], %7 {strides = array<i32>} : memref<16x384xbf16, #tpu.memory_space<vmem>>, vector<16x128xbf16>,
    %c0_9 = arith.constant 0 : index
    %c0_10 = arith.constant 0 : index
    %9 = vector.load %arg12[%c0_9, %c0_10] : memref<16x384xbf16, #tpu.memory_space<vmem>>, vector<16x384xbf16>
    %c0_11 = arith.constant 0 : index
    %c0_12 = arith.constant 0 : index
    %10 = vector.load %arg5[%c0_11, %c0_12] : memref<384x256xbf16, #tpu.memory_space<vmem>>, vector<384x256xbf16>
    %cst = arith.constant dense<0.000000e+00> : vector<16x256xf32>
    %11 = tpu.matmul %9, %10, %cst {dimension_numbers = #tpu.dot_dimension_numbers<[1], [0], [0], [1], [0, 0, 1, 1], [], []>} : vector<16x384xbf16>, vector<384x256xbf16>, vector<16x256xf32> -> vector<16x256xf32>
    %c0_13 = arith.constant 0 : index
    %c0_14 = arith.constant 0 : index
    %12 = vector.load %arg6[%c0_13, %c0_14] : memref<1x256xf32, #tpu.memory_space<vmem>>, vector<1x256xf32>
    %13 = vector.broadcast %12 : vector<1x256xf32> to vector<16x256xf32>
    %14 = arith.addf %11, %13 : vector<16x256xf32>
    %cst_15 = arith.constant dense<0.000000e+00> : vector<16xf32>
    %15 = vector.multi_reduction <add>, %14, %cst_15 [1] : vector<16x256xf32> to vector<16xf32>
    %16 = vector.shape_cast %15 : vector<16xf32> to vector<16x1xf32>
    %cst_16 = arith.constant 2.560000e+02 : f32
    %17 = vector.broadcast %cst_16 : f32 to vector<16x1xf32>
    %18 = arith.divf %16, %17 : vector<16x1xf32>
    %19 = vector.broadcast %18 : vector<16x1xf32> to vector<16x256xf32>
    %20 = arith.subf %14, %19 : vector<16x256xf32>
    %21 = arith.mulf %20, %20 : vector<16x256xf32>
    %cst_17 = arith.constant dense<0.000000e+00> : vector<16xf32>
    %22 = vector.multi_reduction <add>, %21, %cst_17 [1] : vector<16x256xf32> to vector<16xf32>
    %23 = vector.shape_cast %22 : vector<16xf32> to vector<16x1xf32>
    %cst_18 = arith.constant 2.560000e+02 : f32
    %24 = vector.broadcast %cst_18 : f32 to vector<16x1xf32>
    %25 = arith.divf %23, %24 : vector<16x1xf32>
    %26 = vector.broadcast %18 : vector<16x1xf32> to vector<16x256xf32>
    %27 = arith.subf %14, %26 : vector<16x256xf32>
    %cst_19 = arith.constant 9.99999974E-6 : f32
    %28 = vector.broadcast %cst_19 : f32 to vector<16x1xf32>
    %29 = arith.addf %25, %28 : vector<16x1xf32>
    %30 = math.rsqrt %29 : vector<16x1xf32>
    %31 = vector.broadcast %30 : vector<16x1xf32> to vector<16x256xf32>
    %32 = arith.mulf %27, %31 : vector<16x256xf32>
    %c0_20 = arith.constant 0 : index
    %c0_21 = arith.constant 0 : index
    %33 = vector.load %arg7[%c0_20, %c0_21] : memref<1x256xf32, #tpu.memory_space<vmem>>, vector<1x256xf32>
    %34 = vector.broadcast %33 : vector<1x256xf32> to vector<16x256xf32>
    %35 = arith.mulf %32, %34 : vector<16x256xf32>
    %c0_22 = arith.constant 0 : index
    %c0_23 = arith.constant 0 : index
    %36 = vector.load %arg8[%c0_22, %c0_23] : memref<1x256xf32, #tpu.memory_space<vmem>>, vector<1x256xf32>
    %37 = vector.broadcast %36 : vector<1x256xf32> to vector<16x256xf32>
    %38 = arith.addf %35, %37 : vector<16x256xf32>
    %c0_24 = arith.constant 0 : index
    %39 = memref.load %arg1[%c0_24] : memref<1xf32, #tpu.memory_space<smem>>
    %cst_25 = arith.constant 0.000000e+00 : f32
    %40 = vector.broadcast %cst_25 : f32 to vector<16x256xf32>
    %41 = arith.maximumf %38, %40 : vector<16x256xf32>
    %cst_26 = arith.constant 0.000000e+00 : f32
    %42 = vector.broadcast %cst_26 : f32 to vector<16x256xf32>
    %43 = arith.minimumf %38, %42 : vector<16x256xf32>
    %44 = vector.broadcast %39 : f32 to vector<16x256xf32>
    %45 = arith.mulf %44, %43 : vector<16x256xf32>
    %46 = arith.addf %41, %45 : vector<16x256xf32>
    %47 = arith.truncf %46 : vector<16x256xf32> to vector<16x256xbf16>
    %c0_27 = arith.constant 0 : index
    %c0_28 = arith.constant 0 : index
    %48 = vector.load %arg9[%c0_27, %c0_28] : memref<256x128xbf16, #tpu.memory_space<vmem>>, vector<256x128xbf16>
    %cst_29 = arith.constant dense<0.000000e+00> : vector<16x128xf32>
    %49 = tpu.matmul %47, %48, %cst_29 {dimension_numbers = #tpu.dot_dimension_numbers<[1], [0], [0], [1], [0, 0, 1, 1], [], []>} : vector<16x256xbf16>, vector<256x128xbf16>, vector<16x128xf32> -> vector<16x128xf32>
    %c0_30 = arith.constant 0 : index
    %c0_31 = arith.constant 0 : index
    %50 = vector.load %arg10[%c0_30, %c0_31] : memref<1x128xf32, #tpu.memory_space<vmem>>, vector<1x128xf32>
    %51 = vector.broadcast %50 : vector<1x128xf32> to vector<16x128xf32>
    %52 = arith.addf %49, %51 : vector<16x128xf32>
    %c0_32 = arith.constant 0 : index
    %c0_33 = arith.constant 0 : index
    %53 = vector.load %arg11[%c0_32, %c0_33] : memref<16x128xf32, #tpu.memory_space<vmem>>, vector<16x128xf32>
    tpu.vector_store %arg11[%c0_32, %c0_33], %52 {strides = array<i32>} : memref<16x128xf32, #tpu.memory_space<vmem>>, vector<16x128xf32>,
    return
  }
  func.func @transform_0(%arg0: i32) -> i32 {
    %c0_i32 = arith.constant 0 : i32
    %c0_i32_0 = arith.constant 0 : i32
    return %c0_i32 : i32
  }
  func.func @transform_1(%arg0: i32) -> (i32, i32) {
    %c0_i32 = arith.constant 0 : i32
    %c0_i32_0 = arith.constant 0 : i32
    return %arg0, %c0_i32 : i32, i32
  }
  func.func @transform_2(%arg0: i32) -> (i32, i32) {
    %c0_i32 = arith.constant 0 : i32
    %c0_i32_0 = arith.constant 0 : i32
    return %arg0, %c0_i32 : i32, i32
  }
  func.func @transform_3(%arg0: i32) -> (i32, i32) {
    %c0_i32 = arith.constant 0 : i32
    %c0_i32_0 = arith.constant 0 : i32
    return %arg0, %c0_i32 : i32, i32
  }
  func.func @transform_4(%arg0: i32) -> (i32, i32) {
    %c0_i32 = arith.constant 0 : i32
    %c0_i32_0 = arith.constant 0 : i32
    %c0_i32_1 = arith.constant 0 : i32
    return %c0_i32, %c0_i32_0 : i32, i32
  }
  func.func @transform_5(%arg0: i32) -> (i32, i32) {
    %c0_i32 = arith.constant 0 : i32
    %c0_i32_0 = arith.constant 0 : i32
    %c0_i32_1 = arith.constant 0 : i32
    return %c0_i32, %c0_i32_0 : i32, i32
  }
  func.func @transform_6(%arg0: i32) -> (i32, i32) {
    %c0_i32 = arith.constant 0 : i32
    %c0_i32_0 = arith.constant 0 : i32
    %c0_i32_1 = arith.constant 0 : i32
    return %c0_i32, %c0_i32_0 : i32, i32
  }
  func.func @transform_7(%arg0: i32) -> (i32, i32) {
    %c0_i32 = arith.constant 0 : i32
    %c0_i32_0 = arith.constant 0 : i32
    %c0_i32_1 = arith.constant 0 : i32
    return %c0_i32, %c0_i32_0 : i32, i32
  }
  func.func @transform_8(%arg0: i32) -> (i32, i32) {
    %c0_i32 = arith.constant 0 : i32
    %c0_i32_0 = arith.constant 0 : i32
    %c0_i32_1 = arith.constant 0 : i32
    return %c0_i32, %c0_i32_0 : i32, i32
  }
  func.func @transform_9(%arg0: i32) -> (i32, i32) {
    %c0_i32 = arith.constant 0 : i32
    %c0_i32_0 = arith.constant 0 : i32
    %c0_i32_1 = arith.constant 0 : i32
    return %c0_i32, %c0_i32_0 : i32, i32
  }
  func.func @transform_10(%arg0: i32) -> (i32, i32) {
    %c0_i32 = arith.constant 0 : i32
    %c0_i32_0 = arith.constant 0 : i32
    return %arg0, %c0_i32 : i32, i32
  }
}

</mosaic_0001>

<bundles_post_ra>
// kernel: tpu_custom_call.1
= control target key start
LH: loop header
LB: loop body
LE: loop exit
PB: predicated region body
PF: predicated region fallthrough
CT: control target
= control target key end

     0   :  { %s2525_s0 = inlined_call_operand.<no memory space> [shape: f32[1], index: 0, kind: input, shape index: {}]   ;;  %s2526_s1 = inlined_call_operand.hbm [shape: f32[20,128], index: 1, kind: input, shape index: {}]   ;;  %s2527_s2 = inlined_call_operand.hbm [shape: f32[20,128], index: 2, kind: input, shape index: {}]   ;;  %s2528_s3 = inlined_call_operand.hbm [shape: f32[20,128], index: 3, kind: input, shape index: {}]   ;;  %s2529_s4 = inlined_call_operand.hbm [shape: bf16[384,256], index: 4, kind: input, shape index: {}]   ;;  %s2530_s5 = inlined_call_operand.vmem [shape: f32[1,256], index: 5, kind: input, shape index: {}]   ;;  %s2531_s6 = inlined_call_operand.vmem [shape: f32[1,256], index: 6, kind: input, shape index: {}]   ;;  %s2532_s7 = inlined_call_operand.vmem [shape: f32[1,256], index: 7, kind: input, shape index: {}]   ;;  %s2533_s8 = inlined_call_operand.hbm [shape: bf16[256,128], index: 8, kind: input, shape index: {}]   ;;  %s2534_s9 = inlined_call_operand.vmem [shape: f32[1,128], index: 9, kind: input, shape index: {}]   ;;  %s2535_s10 = inlined_call_operand.hbm [shape: f32[20,128], index: 10, kind: output, shape index: {}]  }
   0x1   :  { %2544 = sst [smem:[#allocation22_spill]] %s2529_s4 }
   0x2   :  { %2545 = sst [smem:[#allocation23_spill]] %s2533_s8 }
   0x3   :  { %15 = sst [smem:[#allocation3]] %s2525_s0 }
   0x4   :  { %16 = vsyncpa [#allocation5], 0 }
   0x5   :  { %18 = vsyncpa [#allocation5 + $0x1], 0 }
   0x6   :  { %19 = vsyncpa [#allocation8], 0 }
   0x7   :  { %21 = vsyncpa [#allocation8 + $0x1], 0 }
   0x8   :  { %22 = vsyncpa [#allocation11], 0 }
   0x9   :  { %23 = vsyncpa [#allocation6], 0 }
   0xa   :  { %25 = vsyncpa [#allocation6 + $0x1], 0  ;;  %s2173_s15 = smov 0   ;;  %s2175_s16 = smov 0  }
   0xb   :  { %s2177_s17 = smov 0   ;;  %s2179_s18 = smov 0  }
   0xc LB: > { %2546 = sst [smem:[#allocation18_spill]] %s2082_s15  ;;  %s2194_s0 = sadd.s32 4294967295, %s2094_s18   ;;  %s2094_s18 = sphi %s2179_s18, %s2570_s18   ;;  %s2090_s17 = sphi %s2177_s17, %s2574_s17   ;;  %s2086_s16 = sphi %s2175_s16, %s2573_s16   ;;  %s2082_s15 = sphi %s2173_s15, %s2572_s15  }
   0xd   : > { %s1369_s19 = sadd.s32 4294967294, %s2094_s18   ;;  %s2198_s20 = sadd.s32 1, %s2094_s18  }
   0xe   : > { %2547 = sst [smem:[#allocation19_spill]] %s2198_s20  ;;  %s59_s21 = sadd.s32 1, %s2090_s17 }
   0xf   : > { %s56_s22 = ssub.s32 %s2094_s18, %s2198_s20  ;;  %p66_p0 = scmp.ne.s32.totalorder %s2090_s17, %s2086_s16 }
  0x10   : > { %p57_p1 = scmp.eq.s32.totalorder %s56_s22, 0  ;;  %p67_p2 = scmp.eq.s32.totalorder %s2094_s18, 0 }
  0x11   : > { %p72_p3 = scmp.ne.s32.totalorder %s2086_s16, %s2082_s15  ;;  %p2542_p4 = scmp.eq.s32.totalorder %s2194_s0, 0 }
  0x12   : > { %s2210_s23 = scalar_select %p57_p1, %s2090_s17, %s59_s21  }
  0x13   : > { %p2212_p5 = por %p67_p2, %p66_p0  ;;  %p2218_p6 = por %p2542_p4, %p72_p3 }
  0x14   : > { %2548 = sst [smem:[#allocation20_spill]] %s2210_s23  ;;  %p274_p7 = scmp.eq.s32.totalorder %s2194_s0, 1 }
  0x15   : > { %p280_p8 = scmp.eq.s32.totalorder %s1369_s19, 1  ;;  %p1370_p9 = scmp.ge.s32.totalorder %s2094_s18, 1 }
  0x16   : > { %p287_p10 = scmp.lt.s32.totalorder %s2094_s18, 3  ;;  %p2225_p11 = por %p274_p7, %p66_p0 }
  0x17   : > { %p2229_p12 = por %p280_p8, %p72_p3  ;;  %s2555_s4 = sld [smem:[#allocation22_spill]] }
  0x18   : > { %s2551_s26 = scalar_select %p2225_p11, 1, 0 }
  0x19   : > { %s2552_s27 = scalar_select %p2229_p12, 1, 0 }
  0x1a   : > { %p2233_p13 = pnand %p1370_p9, %p287_p10  ;;  %s2096_s12 = smov [#allocation10]  }
  0x1b   : > { %2553 = sst [smem:[#allocation21_spill]] %s2552_s27  ;;  %s303_s13 = sshll.u32 %s2096_s12, 4  ;;  %s304_s13 = int_to_ptr.vmem [resolvable:$true] %s303_s13 }
  0x1c   : > { %p1762_p1 = pneg %p2233_p13  ;;  %s2556_s8 = sld [smem:[#allocation23_spill]] }
  0x1d   : > { %s301_s11 = sshll.u32 %s2555_s4, 4  ;;  %s2097_s22 = smov 128   ;;  %s302_s11 = int_to_ptr.hbm [resolvable:$true] %s301_s11 }
  0x1e   : > { %p1763_p0 = pnand %p1762_p1, %p2542_p4  ;;  %s2098_s23 = smov 8  }
  0x1f   : > { %s2099_s20 = smov [#allocation12]   ;;  %s2100_s30 = smov 64  }
  0x20   : > { %1765 = dma.hbm_to_vmem [thread:$0]  (!%p1763_p0), %s302_s11, 6144, %s304_s13, [#allocation11], %s2097_s22, %s2097_s22, %s2098_s23  }
  0x21   : > { %s326_s29 = sshll.u32 %s2099_s20, 4  ;;  %s2101_s4 = smov 4   ;;  %s327_s29 = int_to_ptr.vmem [resolvable:$true] %s326_s29 }
  0x22   : > { %s324_s21 = sshll.u32 %s2556_s8, 4  ;;  %p2539_p2 = scmp.ge.s32.totalorder %s2094_s18, 2  ;;  %s325_s21 = int_to_ptr.hbm [resolvable:$true] %s324_s21 }
  0x23   : > { %1768 = dma.hbm_to_vmem [thread:$0]  (!%p1763_p0), %s325_s21, 2048, %s327_s29, [#allocation11], %s2100_s30, %s2100_s30, %s2101_s4  }
  0x24   : > { %339 = sbr.rel (%p2539_p2) target bundleno = 151 (0x97), region = 44 }
  0x29   : > { %342 = sbr.rel (!%p2212_p5) target bundleno = 78 (0x4e), region = 48  ;;  %s343_s12 = sand.u32 (%p2212_p5), 1, %s2090_s17  }
  0x2a   : > { %s1375_s14 = sshll.u32 (%p2212_p5), %s2094_s18, 1  ;;  %s1374_s19 = sshll.u32 (%p2212_p5), %s343_s12, 4 }
  0x2b   : > { %s349_s23 = ssub.s32 (%p2212_p5), 3, %s1375_s14  ;;  %s2257_s13 = scalar_lea.sflag (%p2212_p5), [#allocation5], %s343_s12 }
  0x2c   : > { %p350_p3 = scmp.lt.s32.totalorder (%p2212_p5), %s349_s23, 2  ;;  %s347_s21 = scalar_lea.vmem (%p2212_p5), [#allocation4], %s1374_s19 }
  0x2e   : > { %s2576_s23 = smov (!%p350_p3, %s349_s23), 2 }
  0x2f   : > { %s1376_s20 = sshll.u32 %s2576_s23, 3 }
  0x30   : > { %s353_s4 = ssub.s32 16, %s1376_s20 }
  0x31   : > { %s354_s11 = sshll.u32 %s353_s4, 4 }
  0x32   : > { %355 = vsyncadd %s2257_s13, %s354_s11  ;;  %p2260_p7 = scmp.ne.s32.totalorder %s1376_s20, 0  ;;  %s1679_s29 = sshll.u32 %s2094_s18, 4 }
  0x33   : > { %s358_s8 = scalar_lea.hbm %s2526_s1, %s1679_s29  ;;  %s2268_s27 = sshll.u32 %s347_s21, 4  ;;  %s363_s27 = int_to_ptr.vmem [resolvable:$true] %s2268_s27 }
  0x34   : > { %s360_s12 = sshll.u32 %s358_s8, 4  ;;  %s2540_s19 = sshll.u32 %s2576_s23, 7  ;;  %s2271_s12 = int_to_ptr.hbm [resolvable:$true] %s360_s12 }
  0x35   : > { %s1892_s4 = sshra.s32 %s2271_s12, 4  ;;  %s1894_s20 = sshrl.u32 %s2540_s19, 4  ;;  %s1893_s4 = int_to_ptr.hbm [resolvable:$true] %s1892_s4 }
  0x36   : > { %s1899_s11 = scalar_lea.hbm %s1893_s4, %s1894_s20  ;;  %s1903_s21 = scalar_lea.hbm %s2526_s1, 24 }
  0x37   : > { %p1900_p8 = scmp.ne.s32.totalorder %s1893_s4, %s1899_s11  ;;  %p1904_p1 = scmp.lt.s32.totalorder %s1893_s4, %s2526_s1 }
  0x38   : > { %p1905_p0 = scmp.lt.s32.totalorder %s1903_s21, %s1899_s11 }
  0x39   : > { %p1901_p9 = pnand %p1900_p8, %p2260_p7 }
  0x3a   : > { %p1906_p3 = por %p1905_p0, %p1904_p1 }
  0x3b   : > { %p1902_p10 = pneg %p1901_p9 }
  0x3d   : > { %p1907_p2 = pnand %p1906_p3, %p1902_p10 }
  0x3f   : > { %1910 = shalt.err (!%p1907_p2)
}
  0x40   : > { %s1911_s19 = sshra.s32 %s363_s27, 4  ;;  %s2102_s30 = smov [#allocation4]   ;;  %s1912_s19 = int_to_ptr.vmem [resolvable:$true] %s1911_s19 }
  0x41   : > { %s1918_s15 = scalar_lea.vmem %s1912_s19, %s1894_s20  ;;  %s1922_s29 = scalar_lea.vmem %s2102_s30, 32 }
  0x42   : > { %p1919_p8 = scmp.ne.s32.totalorder %s1912_s19, %s1918_s15  ;;  %p1924_p12 = scmp.lt.s32.totalorder %s1922_s29, %s1918_s15 }
  0x44   : > { %p1920_p9 = pnand %p1919_p8, %p2260_p7 }
  0x46   : > { %p1921_p4 = pneg %p1920_p9 }
  0x48   : > { %p1926_p11 = pnand %p1924_p12, %p1921_p4 }
  0x4a   : > { %1929 = shalt.err (!%p1926_p11)
}
  0x4b   : > { %s2103_s4 = smov 128   ;;  %s2104_s11 = smov 8  }
  0x4c   : > { %s2558_s21 = sshll.u32 %s2576_s23, 7 }
  0x4d   : > { %368 = dma.hbm_to_vmem [thread:$0]  (%p2260_p7), %s2271_s12, %s2558_s21, %s363_s27, %s2257_s13, %s2103_s4, %s2103_s4, %s2104_s11  }
  0x4e PF: > { %371 = sbr.rel (!%p2212_p5) target bundleno = 115 (0x73), region = 52  ;;  %s372_s15 = sand.u32 (%p2212_p5), 1, %s2094_s18  }
  0x4f   : > { %s374_s19 = sand.u32 (%p2212_p5), 1, %s2090_s17   ;;  %s1382_s14 = sshll.u32 (%p2212_p5), %s2094_s18, 1 }
  0x50   : > { %s1381_s20 = sshll.u32 (%p2212_p5), %s374_s19, 4  ;;  %s378_s8 = ssub.s32 (%p2212_p5), 3, %s1382_s14 }
  0x51   : > { %p379_p4 = scmp.lt.s32.totalorder (%p2212_p5), %s378_s8, 2  ;;  %s2305_s27 = scalar_lea.sflag (%p2212_p5), [#allocation8], %s372_s15 }
  0x52   : > { %s376_s13 = scalar_lea.vmem (%p2212_p5), [#allocation7], %s1381_s20 }
  0x53   : > { %s2578_s8 = smov (!%p379_p4, %s378_s8), 2 }
  0x54   : > { %s1383_s22 = sshll.u32 %s2578_s8, 3 }
  0x55   : > { %s382_s30 = ssub.s32 16, %s1383_s22 }
  0x56   : > { %s383_s23 = sshll.u32 %s382_s30, 4 }
  0x57   : > { %384 = vsyncadd %s2305_s27, %s383_s23  ;;  %p2308_p11 = scmp.ne.s32.totalorder %s1383_s22, 0  ;;  %s1680_s29 = sshll.u32 %s2094_s18, 4 }
  0x58   : > { %s387_s21 = scalar_lea.hbm %s2527_s2, %s1680_s29  ;;  %s2316_s19 = sshll.u32 %s376_s13, 4  ;;  %s392_s19 = int_to_ptr.vmem [resolvable:$true] %s2316_s19 }
  0x59   : > { %s389_s15 = sshll.u32 %s387_s21, 4  ;;  %s2543_s20 = sshll.u32 %s2578_s8, 7  ;;  %s2319_s15 = int_to_ptr.hbm [resolvable:$true] %s389_s15 }
  0x5a   : > { %s1931_s14 = sshra.s32 %s2319_s15, 4  ;;  %s1933_s22 = sshrl.u32 %s2543_s20, 4  ;;  %s1932_s14 = int_to_ptr.hbm [resolvable:$true] %s1931_s14 }
  0x5b   : > { %s1938_s30 = scalar_lea.hbm %s1932_s14, %s1933_s22  ;;  %s1942_s13 = scalar_lea.hbm %s2527_s2, 24 }
  0x5c   : > { %p1939_p12 = scmp.ne.s32.totalorder %s1932_s14, %s1938_s30  ;;  %p1943_p10 = scmp.lt.s32.totalorder %s1932_s14, %s2527_s2 }
  0x5d   : > { %p1944_p1 = scmp.lt.s32.totalorder %s1942_s13, %s1938_s30 }
  0x5e   : > { %p1940_p2 = pnand %p1939_p12, %p2308_p11 }
  0x5f   : > { %p1945_p0 = por %p1944_p1, %p1943_p10 }
  0x60   : > { %p1941_p7 = pneg %p1940_p2 }
  0x62   : > { %p1946_p3 = pnand %p1945_p0, %p1941_p7 }
  0x64   : > { %1949 = shalt.err (!%p1946_p3)
}
  0x65   : > { %s1950_s21 = sshra.s32 %s392_s19, 4  ;;  %s2105_s23 = smov [#allocation7]   ;;  %s1951_s21 = int_to_ptr.vmem [resolvable:$true] %s1950_s21 }
  0x66   : > { %s1957_s20 = scalar_lea.vmem %s1951_s21, %s1933_s22  ;;  %s1961_s29 = scalar_lea.vmem %s2105_s23, 32 }
  0x67   : > { %p1958_p8 = scmp.ne.s32.totalorder %s1951_s21, %s1957_s20  ;;  %p1963_p12 = scmp.lt.s32.totalorder %s1961_s29, %s1957_s20 }
  0x69   : > { %p1959_p9 = pnand %p1958_p8, %p2308_p11 }
  0x6b   : > { %p1960_p4 = pneg %p1959_p9 }
  0x6d   : > { %p1965_p2 = pnand %p1963_p12, %p1960_p4 }
  0x6f   : > { %1968 = shalt.err (!%p1965_p2)
}
  0x70   : > { %s2106_s14 = smov 128   ;;  %s2107_s30 = smov 8  }
  0x71   : > { %s2560_s13 = sshll.u32 %s2578_s8, 7 }
  0x72   : > { %397 = dma.hbm_to_vmem [thread:$0]  (%p2308_p11), %s2319_s15, %s2560_s13, %s392_s19, %s2305_s27, %s2106_s14, %s2106_s14, %s2107_s30  }
  0x73 PF: > { %400 = sbr.rel (!%p2212_p5) target bundleno = 151 (0x97), region = 56  ;;  %s401_s20 = sand.u32 (%p2212_p5), 1, %s2094_s18  }
  0x74   : > { %s403_s22 = sand.u32 (%p2212_p5), 1, %s2090_s17   ;;  %s1389_s11 = sshll.u32 (%p2212_p5), %s2094_s18, 1 }
  0x75   : > { %s1388_s4 = sshll.u32 (%p2212_p5), %s403_s22, 4  ;;  %s407_s21 = ssub.s32 (%p2212_p5), 3, %s1389_s11 }
  0x76   : > { %p408_p7 = scmp.lt.s32.totalorder (%p2212_p5), %s407_s21, 2  ;;  %s2353_s27 = scalar_lea.sflag (%p2212_p5), [#allocation8], %s401_s20 }
  0x77   : > { %s405_s24 = scalar_lea.vmem (%p2212_p5), [#allocation9], %s1388_s4 }
  0x78   : > { %s2580_s21 = smov (!%p408_p7, %s407_s21), 2 }
  0x79   : > { %s1390_s12 = sshll.u32 %s2580_s21, 3 }
  0x7a   : > { %s411_s23 = ssub.s32 16, %s1390_s12 }
  0x7b   : > { %s412_s8 = sshll.u32 %s411_s23, 4 }
  0x7c   : > { %413 = vsyncadd %s2353_s27, %s412_s8  ;;  %p2356_p5 = scmp.ne.s32.totalorder %s1390_s12, 0  ;;  %s1681_s15 = sshll.u32 %s2094_s18, 4 }
  0x7d   : > { %s416_s30 = scalar_lea.hbm %s2528_s3, %s1681_s15  ;;  %s2364_s13 = sshll.u32 %s405_s24, 4  ;;  %s421_s13 = int_to_ptr.vmem [resolvable:$true] %s2364_s13 }
  0x7e   : > { %s418_s20 = sshll.u32 %s416_s30, 4  ;;  %s1394_s22 = sshll.u32 %s2580_s21, 7  ;;  %s2367_s20 = int_to_ptr.hbm [resolvable:$true] %s418_s20 }
  0x7f   : > { %s1970_s4 = sshra.s32 %s2367_s20, 4  ;;  %s1972_s11 = sshrl.u32 %s1394_s22, 4  ;;  %s1971_s4 = int_to_ptr.hbm [resolvable:$true] %s1970_s4 }
  0x80   : > { %s1977_s12 = scalar_lea.hbm %s1971_s4, %s1972_s11  ;;  %s1981_s24 = scalar_lea.hbm %s2528_s3, 24 }
  0x81   : > { %p1978_p11 = scmp.ne.s32.totalorder %s1971_s4, %s1977_s12  ;;  %p1982_p0 = scmp.lt.s32.totalorder %s1971_s4, %s2528_s3 }
  0x82   : > { %p1983_p3 = scmp.lt.s32.totalorder %s1981_s24, %s1977_s12 }
  0x83   : > { %p1979_p10 = pnand %p1978_p11, %p2356_p5 }
  0x84   : > { %p1984_p8 = por %p1983_p3, %p1982_p0 }
  0x85   : > { %p1980_p1 = pneg %p1979_p10 }
  0x87   : > { %p1985_p9 = pnand %p1984_p8, %p1980_p1 }
  0x89   : > { %1988 = shalt.err (!%p1985_p9)
}
  0x8a   : > { %s1989_s14 = sshra.s32 %s421_s13, 4  ;;  %s2108_s23 = smov [#allocation9]   ;;  %s1990_s14 = int_to_ptr.vmem [resolvable:$true] %s1989_s14 }
  0x8b   : > { %s1996_s30 = scalar_lea.vmem %s1990_s14, %s1972_s11  ;;  %s2000_s8 = scalar_lea.vmem %s2108_s23, 32 }
  0x8c   : > { %p1997_p4 = scmp.ne.s32.totalorder %s1990_s14, %s1996_s30  ;;  %p2002_p7 = scmp.lt.s32.totalorder %s2000_s8, %s1996_s30 }
  0x8e   : > { %p1998_p12 = pnand %p1997_p4, %p2356_p5 }
  0x90   : > { %p1999_p2 = pneg %p1998_p12 }
  0x92   : > { %p2004_p11 = pnand %p2002_p7, %p1999_p2 }
  0x94   : > { %2007 = shalt.err (!%p2004_p11)
}
  0x95   : > { %s2109_s4 = smov 128   ;;  %s2110_s12 = smov 8  }
  0x96   : > { %426 = dma.hbm_to_vmem [thread:$0]  (%p2356_p5), %s2367_s20, %s1394_s22, %s421_s13, %s2353_s27, %s2109_s4, %s2109_s4, %s2110_s12  }
  0x97 PF: > { %432 = sbr.rel (%p2233_p13) target bundleno = 821 (0x335), region = 60  ;;  %s2396_s11 = sand.u32 (!%p2233_p13), 1, %s2086_s16  }
  0x98   : > { %s2399_s24 = sshll.u32 (!%p2233_p13), %s2396_s11, 4  ;;  %s435_s15 = scalar_lea.sflag (!%p2233_p13), [#allocation5], %s2396_s11 }
  0x99   : > { %s438_s29 = scalar_lea.vmem (!%p2233_p13), [#allocation4], %s2399_s24 }
  0x9c   : > { %2065 = dma.done.wait (%p2218_p6), %s435_s15, 256  }
  0x9d   : > { %2067 = vsyncadd (%p2218_p6), %s435_s15, 4294967040  ;;  %s444_s28 = sand.u32 1, %s2194_s0   ;;  %s448_s27 = scalar_lea.vmem [#allocation7], %s2399_s24 }
  0x9e   : > { %s445_s21 = scalar_lea.sflag [#allocation8], %s444_s28 }
  0x9f   : > { %2069 = dma.done.wait (%p2218_p6), %s445_s21, 512  }
  0xa0   : > { %2071 = vsyncadd (%p2218_p6), %s445_s21, 4294966784  ;;  %s458_s19 = scalar_lea.vmem [#allocation9], %s2399_s24  ;;  %p2562_p13 = scmp.eq.s32.totalorder %s2194_s0, 0 }
  0xa2   : > { %2073 = dma.done.wait (%p2562_p13), [#allocation11], 8192   ;;  %p2563_p5 = pmov %p2562_p13 }
  0xa3   : > { %v1472_v0 = vld [vmem:[#allocation10 + $0x70] sm:$0xf]  ;;  %v1700_v1 = vld [vmem:[#allocation10 + $0x74] sm:$0xf0]  ;;  %v1464_v9 = vld [vmem:[#allocation10 + $0x60] sm:$0xf] }
  0xa4   : > { %2075 = vsyncadd (%p2563_p5), [#allocation11], 4294959104  ;;  %v1536_v2 = vld [vmem:[#allocation10 + $0xf0] sm:$0xf]  ;;  %v1473_v3 = vor.u32 %v1700_v1, %v1472_v0  ;;  %v1716_v4 = vld [vmem:[#allocation10 + $0xf4] sm:$0xf0] }
  0xa5   : > { %v1600_v5 = vld [vmem:[#allocation10 + $0x170] sm:$0xf]  ;;  %v1732_v6 = vld [vmem:[#allocation10 + $0x174] sm:$0xf0]  ;;  %v1537_v7 = vor.u32 %v1716_v4, %v1536_v2  ;;  %v1698_v10 = vld [vmem:[#allocation10 + $0x64] sm:$0xf0] }
  0xa6   : > { %v1601_v8 = vor.u32 %v1732_v6, %v1600_v5  ;;  %v1528_v11 = vld [vmem:[#allocation10 + $0xe0] sm:$0xf]  ;;  %868 = vmatpush.bf16.msra.mxu0 %v1473_v3  ;;  %v1465_v12 = vor.u32 %v1698_v10, %v1464_v9  ;;  %v1714_v13 = vld [vmem:[#allocation10 + $0xe4] sm:$0xf0]  ;;  %v1456_v18 = vld [vmem:[#allocation10 + $0x50] sm:$0xf] }
  0xa7   : > { %v1592_v14 = vld [vmem:[#allocation10 + $0x160] sm:$0xf]  ;;  %v1730_v15 = vld [vmem:[#allocation10 + $0x164] sm:$0xf0]  ;;  %882 = vmatpush.bf16.msra.mxu1 %v1537_v7  ;;  %v1529_v16 = vor.u32 %v1714_v13, %v1528_v11  ;;  %v1696_v19 = vld [vmem:[#allocation10 + $0x54] sm:$0xf0] }
  0xa8   : > { %896 = vmatpush.bf16.msra.mxu2 %v1601_v8  ;;  %v1593_v17 = vor.u32 %v1730_v15, %v1592_v14  ;;  %v1520_v20 = vld [vmem:[#allocation10 + $0xd0] sm:$0xf]  ;;  %v1712_v21 = vld [vmem:[#allocation10 + $0xd4] sm:$0xf0]  ;;  %v1457_v24 = vor.u32 %v1696_v19, %v1456_v18  ;;  %v1699_v25 = vld [vmem:[#allocation10 + $0x74] sm:$0xf] }
  0xa9   : > { %v1584_v22 = vld [vmem:[#allocation10 + $0x150] sm:$0xf]  ;;  %v1728_v23 = vld [vmem:[#allocation10 + $0x154] sm:$0xf0]  ;;  %v1474_v26 = vld [vmem:[#allocation10 + $0x78] sm:$0xf0]  ;;  %v1521_v27 = vor.u32 %v1712_v21, %v1520_v20 }
  0xaa   : > { %869 = vmatpush.bf16.msra.mxu0 %v1465_v12  ;;  %v1585_v28 = vor.u32 %v1728_v23, %v1584_v22  ;;  %v1448_v29 = vld [vmem:[#allocation10 + $0x40] sm:$0xf]  ;;  %v1694_v30 = vld [vmem:[#allocation10 + $0x44] sm:$0xf0]  ;;  %v1477_v32 = vor.u32 %v1699_v25, %v1474_v26  ;;  %v1697_v36 = vld [vmem:[#allocation10 + $0x64] sm:$0xf] }
  0xab   : > { %883 = vmatpush.bf16.msra.mxu1 %v1529_v16  ;;  %v1512_v31 = vld [vmem:[#allocation10 + $0xc0] sm:$0xf]  ;;  %v1710_v33 = vld [vmem:[#allocation10 + $0xc4] sm:$0xf0]  ;;  %v1466_v37 = vld [vmem:[#allocation10 + $0x68] sm:$0xf0]  ;;  %v1449_v38 = vor.u32 %v1694_v30, %v1448_v29 }
  0xac   : > { %897 = vmatpush.bf16.msra.mxu2 %v1593_v17  ;;  %v1576_v34 = vld [vmem:[#allocation10 + $0x140] sm:$0xf]  ;;  %v1726_v35 = vld [vmem:[#allocation10 + $0x144] sm:$0xf0]  ;;  %910 = vmatpush.bf16.msra.mxu3 %v1477_v32  ;;  %v1440_v39 = vld [vmem:[#allocation10 + $0x30] sm:$0xf]  ;;  %v1469_v41 = vor.u32 %v1697_v36, %v1466_v37  ;;  %v1513_v42 = vor.u32 %v1710_v33, %v1512_v31 }
  0xad   : > { %v1692_v40 = vld [vmem:[#allocation10 + $0x34] sm:$0xf0]  ;;  %v1577_v43 = vor.u32 %v1726_v35, %v1576_v34  ;;  %v1504_v44 = vld [vmem:[#allocation10 + $0xb0] sm:$0xf]  ;;  %v1695_v46 = vld [vmem:[#allocation10 + $0x54] sm:$0xf] }
  0xae   : > { %870 = vmatpush.bf16.msra.mxu0 %v1457_v24  ;;  %v1708_v45 = vld [vmem:[#allocation10 + $0xb4] sm:$0xf0]  ;;  %v1568_v47 = vld [vmem:[#allocation10 + $0x130] sm:$0xf]  ;;  %v1458_v49 = vld [vmem:[#allocation10 + $0x58] sm:$0xf0]  ;;  %v1441_v51 = vor.u32 %v1692_v40, %v1440_v39 }
  0xaf   : > { %884 = vmatpush.bf16.msra.mxu1 %v1521_v27  ;;  %v1724_v48 = vld [vmem:[#allocation10 + $0x134] sm:$0xf0]  ;;  %v1461_v50 = vor.u32 %v1695_v46, %v1458_v49  ;;  %v1693_v52 = vld [vmem:[#allocation10 + $0x44] sm:$0xf]  ;;  %v1450_v53 = vld [vmem:[#allocation10 + $0x48] sm:$0xf0]  ;;  %v1505_v54 = vor.u32 %v1708_v45, %v1504_v44 }
  0xb0   : > { %898 = vmatpush.bf16.msra.mxu2 %v1585_v28  ;;  %911 = vmatpush.bf16.msra.mxu3 %v1469_v41  ;;  %v1569_v55 = vor.u32 %v1724_v48, %v1568_v47  ;;  %v1432_v56 = vld [vmem:[#allocation10 + $0x20] sm:$0xf]  ;;  %v1690_v57 = vld [vmem:[#allocation10 + $0x24] sm:$0xf0]  ;;  %v1424_v62 = vld [vmem:[#allocation10 + $0x10] sm:$0xf]  ;;  %v1453_v0 = vor.u32 %v1693_v52, %v1450_v53 }
  0xb1   : > { %v1496_v58 = vld [vmem:[#allocation10 + $0xa0] sm:$0xf]  ;;  %v1706_v59 = vld [vmem:[#allocation10 + $0xa4] sm:$0xf0]  ;;  %v1688_v63 = vld [vmem:[#allocation10 + $0x14] sm:$0xf0]  ;;  %v1433_v1 = vor.u32 %v1690_v57, %v1432_v56 }
  0xb2   : > { %871 = vmatpush.bf16.msra.mxu0 %v1449_v38  ;;  %v1560_v60 = vld [vmem:[#allocation10 + $0x120] sm:$0xf]  ;;  %v1722_v61 = vld [vmem:[#allocation10 + $0x124] sm:$0xf0]  ;;  %v1488_v2 = vld [vmem:[#allocation10 + $0x90] sm:$0xf]  ;;  %v1497_v5 = vor.u32 %v1706_v59, %v1496_v58  ;;  %v1425_v16 = vor.u32 %v1688_v63, %v1424_v62 }
  0xb3   : > { %885 = vmatpush.bf16.msra.mxu1 %v1513_v42  ;;  %v1691_v3 = vld [vmem:[#allocation10 + $0x34] sm:$0xf]  ;;  %v1442_v4 = vld [vmem:[#allocation10 + $0x38] sm:$0xf0]  ;;  %v1561_v6 = vor.u32 %v1722_v61, %v1560_v60  ;;  %v1704_v7 = vld [vmem:[#allocation10 + $0x94] sm:$0xf0] }
  0xb4   : > { %899 = vmatpush.bf16.msra.mxu2 %v1577_v43  ;;  %912 = vmatpush.bf16.msra.mxu3 %v1461_v50  ;;  %v1552_v8 = vld [vmem:[#allocation10 + $0x110] sm:$0xf]  ;;  %v1720_v9 = vld [vmem:[#allocation10 + $0x114] sm:$0xf0]  ;;  %v1416_v10 = vld [vmem:[#allocation10] sm:$0xf]  ;;  %v1445_v12 = vor.u32 %v1691_v3, %v1442_v4  ;;  %v1489_v17 = vor.u32 %v1704_v7, %v1488_v2 }
  0xb5   : > { %v1686_v11 = vld [vmem:[#allocation10 + $0x4] sm:$0xf0]  ;;  %v1689_v13 = vld [vmem:[#allocation10 + $0x24] sm:$0xf]  ;;  %v1434_v14 = vld [vmem:[#allocation10 + $0x28] sm:$0xf0]  ;;  %v1553_v18 = vor.u32 %v1720_v9, %v1552_v8 }
  0xb6   : > { %872 = vmatpush.bf16.msra.mxu0 %v1441_v51  ;;  %v548_v15 = vld [vmem:[%s458_s19] sm:$0xff]  ;;  %v1702_v20 = vld [vmem:[#allocation10 + $0x84] sm:$0xf0]  ;;  %v1538_v26 = vld [vmem:[#allocation10 + $0xf8] sm:$0xf0]  ;;  %v1437_v34 = vor.u32 %v1689_v13, %v1434_v14  ;;  %v1417_v37 = vor.u32 %v1686_v11, %v1416_v10  ;;  %s1029_s23 = sld [smem:[#allocation3]] }
  0xb7   : > { %886 = vmatpush.bf16.msra.mxu1 %v1505_v54  ;;  %v1480_v19 = vld [vmem:[#allocation10 + $0x80] sm:$0xf]  ;;  %v549_v21 = vld [vmem:[%s458_s19 + $0x8] sm:$0xff]  ;;  %v550_v22 = vpack.c.bf16 %v548_v15, %v548_v15  ;;  %v1715_v25 = vld [vmem:[#allocation10 + $0xf4] sm:$0xf]  ;;  %s515_s12 = scalar_lea.vmem [#allocation13], %s2399_s24 }
  0xb8   : > { %900 = vmatpush.bf16.msra.mxu2 %v1569_v55  ;;  %913 = vmatpush.bf16.msra.mxu3 %v1453_v0  ;;  %v536_v23 = vld [vmem:[%s438_s29] sm:$0xff]  ;;  %v537_v24 = vld [vmem:[%s438_s29 + $0x8] sm:$0xff]  ;;  %v551_v28 = vpack.c.bf16 %v549_v21, %v549_v21  ;;  %v1481_v42 = vor.u32 %v1702_v20, %v1480_v19  ;;  %v1541_v43 = vor.u32 %v1715_v25, %v1538_v26  ;;  %s1212_s15 = scalar_lea.sflag [#allocation6], %s2396_s11  ;;  %p2564_p6 = scmp.ne.s32.totalorder %s2551_s26, 0 }
  0xb9   : > { %v1731_v27 = vld [vmem:[#allocation10 + $0x174] sm:$0xf]  ;;  %v538_v29 = vpack.c.bf16 %v536_v23, %v536_v23  ;;  %v539_v30 = vpack.c.bf16 %v537_v24, %v537_v24  ;;  %v1602_v31 = vld [vmem:[#allocation10 + $0x178] sm:$0xf0]  ;;  %v1544_v32 = vld [vmem:[#allocation10 + $0x100] sm:$0xf] }
  0xba   : > { %873 = vmatpush.bf16.msra.mxu0 %v1433_v1  ;;  %552 = vst [vmem:[#allocation2 + $0x8] sm:$0xf] %v550_v22  ;;  %v1718_v33 = vld [vmem:[#allocation10 + $0x104] sm:$0xf0]  ;;  %v542_v35 = vld [vmem:[%s448_s27] sm:$0xff]  ;;  %v1605_v44 = vor.u32 %v1731_v27, %v1602_v31  ;;  %s1671_s29 = sshll.u32 (%p2564_p6), %s2194_s0, 1 }
  0xbb   : > { %887 = vmatpush.bf16.msra.mxu1 %v1497_v5  ;;  %553 = vst [vmem:[#allocation2 + $0x14] sm:$0xf] %v551_v28  ;;  %v543_v36 = vld [vmem:[%s448_s27 + $0x8] sm:$0xff]  ;;  %v1687_v38 = vld [vmem:[#allocation10 + $0x14] sm:$0xf]  ;;  %v544_v40 = vpack.c.bf16 %v542_v35, %v542_v35  ;;  %v1545_v45 = vor.u32 %v1718_v33, %v1544_v32  ;;  %s1220_s28 = ssub.s32 (%p2564_p6), 3, %s1671_s29 }
  0xbc   : > { %901 = vmatpush.bf16.msra.mxu2 %v1561_v6  ;;  %914 = vmatpush.bf16.msra.mxu3 %v1445_v12  ;;  %540 = vst [vmem:[#allocation2] sm:$0xf] %v538_v29  ;;  %v1426_v39 = vld [vmem:[#allocation10 + $0x18] sm:$0xf0]  ;;  %v545_v41 = vpack.c.bf16 %v543_v36, %v543_v36  ;;  %v1713_v46 = vld [vmem:[#allocation10 + $0xe4] sm:$0xf] }
  0xbd   : > { %541 = vst [vmem:[#allocation2 + $0xc] sm:$0xf] %v539_v30  ;;  %v1530_v47 = vld [vmem:[#allocation10 + $0xe8] sm:$0xf0]  ;;  %v1729_v48 = vld [vmem:[#allocation10 + $0x164] sm:$0xf]  ;;  %v1429_v50 = vor.u32 %v1687_v38, %v1426_v39 }
  0xbe   : > { %874 = vmatpush.bf16.msra.mxu0 %v1425_v16  ;;  %546 = vst [vmem:[#allocation2 + $0x4] sm:$0xf] %v544_v40  ;;  %v1594_v49 = vld [vmem:[#allocation10 + $0x168] sm:$0xf0]  ;;  %v1685_v51 = vld [vmem:[#allocation10 + $0x4] sm:$0xf]  ;;  %v1533_v53 = vor.u32 %v1713_v46, %v1530_v47 }
  0xbf   : > { %888 = vmatpush.bf16.msra.mxu1 %v1489_v17  ;;  %547 = vst [vmem:[#allocation2 + $0x10] sm:$0xf] %v545_v41  ;;  %v1418_v52 = vld [vmem:[#allocation10 + $0x8] sm:$0xf0]  ;;  %v1597_v55 = vor.u32 %v1729_v48, %v1594_v49  ;;  %v1711_v57 = vld [vmem:[#allocation10 + $0xd4] sm:$0xf] }
  0xc0   : > { %902 = vmatpush.bf16.msra.mxu2 %v1553_v18  ;;  %915 = vmatpush.bf16.msra.mxu3 %v1437_v34  ;;  %v1522_v58 = vld [vmem:[#allocation10 + $0xd8] sm:$0xf0]  ;;  %v1727_v61 = vld [vmem:[#allocation10 + $0x154] sm:$0xf]  ;;  %v1421_v63 = vor.u32 %v1685_v51, %v1418_v52  ;;  %v1709_v6 = vld [vmem:[#allocation10 + $0xc4] sm:$0xf] }
  0xc1   : > { %v1412_v54 = vld [vmem:[#allocation2 + $0x8] sm:$0xf]  ;;  %v1586_v62 = vld [vmem:[#allocation10 + $0x158] sm:$0xf0]  ;;  %v1525_v2 = vor.u32 %v1711_v57, %v1522_v58  ;;  %v1514_v7 = vld [vmem:[#allocation10 + $0xc8] sm:$0xf0] }
  0xc2   : > { %875 = vmatpush.bf16.msra.mxu0 %v1417_v37  ;;  %v1684_v56 = vld [vmem:[#allocation2 + $0x10] sm:$0xf0]  ;;  %v1589_v4 = vor.u32 %v1727_v61, %v1586_v62  ;;  %v1725_v9 = vld [vmem:[#allocation10 + $0x144] sm:$0xf]  ;;  %v1578_v10 = vld [vmem:[#allocation10 + $0x148] sm:$0xf0]  ;;  %v1517_v11 = vor.u32 %v1709_v6, %v1514_v7 }
  0xc3   : > { %889 = vmatpush.bf16.msra.mxu1 %v1481_v42  ;;  %v1413_v59 = vor.u32 %v1684_v56, %v1412_v54  ;;  %v1404_v60 = vld [vmem:[#allocation2] sm:$0xf]  ;;  %v1581_v12 = vor.u32 %v1725_v9, %v1578_v10  ;;  %v1707_v13 = vld [vmem:[#allocation10 + $0xb4] sm:$0xf]  ;;  %v1506_v14 = vld [vmem:[#allocation10 + $0xb8] sm:$0xf0] }
  0xc4   : > { %903 = vmatpush.bf16.msra.mxu2 %v1545_v45  ;;  %916 = vmatpush.bf16.msra.mxu3 %v1429_v50  ;;  %v1683_v0 = vld [vmem:[#allocation2 + $0x8] sm:$0xf0]  ;;  %v1570_v16 = vld [vmem:[#allocation10 + $0x138] sm:$0xf0]  ;;  %v1509_v17 = vor.u32 %v1707_v13, %v1506_v14  ;;  %v1705_v19 = vld [vmem:[#allocation10 + $0xa4] sm:$0xf] }
  0xc5   : > { %v1405_v1 = vor.u32 %v1683_v0, %v1404_v60  ;;  %v1682_v3 = vld [vmem:[#allocation2 + $0x4] sm:$0xf]  ;;  %v1723_v15 = vld [vmem:[#allocation10 + $0x134] sm:$0xf]  ;;  %v1721_v21 = vld [vmem:[#allocation10 + $0x124] sm:$0xf] }
  0xc6   : > { %924 = vmatpush.bf16.msrb.mxu0 %v1541_v43  ;;  %v1406_v5 = vld [vmem:[#allocation2 + $0xc] sm:$0xf0]  ;;  %v1573_v18 = vor.u32 %v1723_v15, %v1570_v16  ;;  %v1498_v20 = vld [vmem:[#allocation10 + $0xa8] sm:$0xf0]  ;;  %v1703_v25 = vld [vmem:[#allocation10 + $0x94] sm:$0xf] }
  0xc7   : > { %938 = vmatpush.bf16.msrb.mxu1 %v1605_v44  ;;  %904 = vmatmul.bf16.vlgmr.msra.gmra.mxu2 %v1413_v59  ;;  %v1409_v8 = vor.u32 %v1682_v3, %v1406_v5  ;;  %v1562_v22 = vld [vmem:[#allocation10 + $0x128] sm:$0xf0]  ;;  %v1501_v23 = vor.u32 %v1705_v19, %v1498_v20  ;;  %v1490_v26 = vld [vmem:[#allocation10 + $0x98] sm:$0xf0]  ;;  %v1719_v27 = vld [vmem:[#allocation10 + $0x114] sm:$0xf] }
  0xc8   : > { %876 = vmatmul.bf16.vlgmr.msra.gmra.mxu0 %v1405_v1  ;;  %917 = vmatpush.bf16.msra.mxu3 %v1421_v63  ;;  %v1565_v24 = vor.u32 %v1721_v21, %v1562_v22  ;;  %v1554_v28 = vld [vmem:[#allocation10 + $0x118] sm:$0xf0]  ;;  %v1493_v29 = vor.u32 %v1703_v25, %v1490_v26  ;;  %v1701_v31 = vld [vmem:[#allocation10 + $0x84] sm:$0xf]  ;;  %v1482_v32 = vld [vmem:[#allocation10 + $0x88] sm:$0xf0] }
  0xc9   : > { %890 = vmatmul.bf16.vlgmr.msra.gmra.mxu1 %v1409_v8  ;;  %v1557_v30 = vor.u32 %v1719_v27, %v1554_v28  ;;  %v1717_v33 = vld [vmem:[#allocation10 + $0x104] sm:$0xf]  ;;  %v1546_v34 = vld [vmem:[#allocation10 + $0x108] sm:$0xf0]  ;;  %v1485_v35 = vor.u32 %v1701_v31, %v1482_v32  ;;  %v606_v39 = vld [vmem:[%s2530_s5] sm:$0x3] }
  0xca   : > { %925 = vmatpush.bf16.msrb.mxu0 %v1533_v53  ;;  %v1549_v36 = vor.u32 %v1717_v33, %v1546_v34  ;;  %v608_v40 = vperm.slane %v606_v39, 0  ;;  %v609_v43 = vperm.slane %v606_v39, 1  ;;  %v1739_v25 = vld [vmem:[#allocation12 + $0x30] sm:$0xff]  ;;  %v1738_v27 = vld [vmem:[#allocation12 + $0x28] sm:$0xff]  ;;  %v1736_v31 = vld [vmem:[#allocation12 + $0x18] sm:$0xff]  ;;  %p1221_p10 = scmp.lt.s32.totalorder (%p2564_p6), %s1220_s28, 2 }
  0xcb   : > { %939 = vmatpush.bf16.msrb.mxu1 %v1597_v55  ;;  %918 = vmatmul.bf16.vlgmr.msra.gmra.mxu3 %v1405_v1  ;;  %v1747_v26 = vld [vmem:[#allocation12 + $0x70] sm:$0xff]  ;;  %v1746_v28 = vld [vmem:[#allocation12 + $0x68] sm:$0xff]  ;;  %v1744_v32 = vld [vmem:[#allocation12 + $0x58] sm:$0xff] }
  0xcc   : > { %v1742_v39 = vld [vmem:[#allocation12 + $0x48] sm:$0xff] }
  0xce   : > { %926 = vmatpush.bf16.msrb.mxu0 %v1525_v2  ;;  %v2111_v2 = vmov 256.0  }
  0xcf   : > { %940 = vmatpush.bf16.msrb.mxu1 %v1589_v4  ;;  %1826 = vrcp.f32 %v2111_v2 }
  0xd2   : > { %927 = vmatpush.bf16.msrb.mxu0 %v1517_v11 }
  0xd3   : > { %941 = vmatpush.bf16.msrb.mxu1 %v1581_v12 }
  0xd5   : > { %v1827_v3 = vpop.eup %1826 }
  0xd6   : > { %928 = vmatpush.bf16.msrb.mxu0 %v1509_v17  ;;  %v959_v4 = vmul.f32 256.0, %v1827_v3  ;;  %vm963_vm0 = vweird.f32 %v1827_v3 }
  0xd7   : > { %942 = vmatpush.bf16.msrb.mxu1 %v1573_v18 }
  0xd8   : > { %v960_v5 = vsub.f32 1.0, %v959_v4 }
  0xda   : > { %929 = vmatpush.bf16.msrb.mxu0 %v1501_v23  ;;  %v961_v6 = vmul.f32 %v1827_v3, %v960_v5  ;;  %v1740_v23 = vld [vmem:[#allocation12 + $0x38] sm:$0xff] }
  0xdb   : > { %943 = vmatpush.bf16.msrb.mxu1 %v1565_v24  ;;  %v1748_v24 = vld [vmem:[#allocation12 + $0x78] sm:$0xff]  ;;  %1181 = vmatpush.bf16.msrb.mxu2 %v1740_v23 }
  0xdc   : > { %v962_v7 = vadd.f32 %v1827_v3, %v961_v6  ;;  %1195 = vmatpush.bf16.msrb.mxu3 %v1748_v24 }
  0xde   : > { %930 = vmatpush.bf16.msrb.mxu0 %v1493_v29  ;;  %v1737_v29 = vld [vmem:[#allocation12 + $0x20] sm:$0xff] }
  0xdf   : > { %944 = vmatpush.bf16.msrb.mxu1 %v1557_v30  ;;  %1182 = vmatpush.bf16.msrb.mxu2 %v1739_v25  ;;  %v1745_v30 = vld [vmem:[#allocation12 + $0x60] sm:$0xff] }
  0xe0   : > { %1196 = vmatpush.bf16.msrb.mxu3 %v1747_v26 }
  0xe2   : > { %931 = vmatpush.bf16.msrb.mxu0 %v1485_v35  ;;  %v1735_v35 = vld [vmem:[#allocation12 + $0x10] sm:$0xff] }
  0xe3   : > { %945 = vmatpush.bf16.msrb.mxu1 %v1549_v36  ;;  %1183 = vmatpush.bf16.msrb.mxu2 %v1738_v27  ;;  %v1743_v36 = vld [vmem:[#allocation12 + $0x50] sm:$0xff] }
  0xe4   : > { %1197 = vmatpush.bf16.msrb.mxu3 %v1746_v28 }
  0xe5   : > { %932 = vmatmul.bf16.vlgmr.msrb.gmra.mxu0 %v1409_v8  ;;  %v964_v8 = vsel %vm963_vm0, %v1827_v3, %v962_v7 }
  0xe6   : > { %946 = vmatmul.bf16.vlgmr.msrb.gmra.mxu1 %v1413_v59 }
  0xe7   : > { %1184 = vmatpush.bf16.msrb.mxu2 %v1737_v29 }
  0xe8   : > { %1198 = vmatpush.bf16.msrb.mxu3 %v1745_v30 }
  0xeb   : > { %1185 = vmatpush.bf16.msrb.mxu2 %v1736_v31 }
  0xec   : > { %1199 = vmatpush.bf16.msrb.mxu3 %v1744_v32  ;;  %v1825_v32 = vld [vmem:[%s2534_s9] ss:$0 sm:$0xff] }
  0xef   : > { %1186 = vmatpush.bf16.msrb.mxu2 %v1735_v35 }
  0xf0   : > { %1200 = vmatpush.bf16.msrb.mxu3 %v1743_v36 }
  0xf4   : > { %1201 = vmatpush.bf16.msrb.mxu3 %v1742_v39 }
 0x145   : > { %v877_v37 = vpop.f32.mrf.mxu0 }
 0x146   : > { %v891_v38 = vpop.f32.mrf.mxu1  ;;  %v878_v45 = vadd.f32 %v877_v37, %v608_v40 }
 0x148   : > { %v892_v48 = vadd.f32 %v891_v38, %v878_v45  ;;  %v1734_v38 = vld [vmem:[#allocation12 + $0x8] sm:$0xff] }
 0x149   : > { %1187 = vmatpush.bf16.msrb.mxu2 %v1734_v38 }
 0x14a   : > { %v905_v47 = vpop.f32.mrf.mxu2 }
 0x14b   : > { %v906_v52 = vadd.f32 %v905_v47, %v892_v48 }
 0x14d   : > { %v879_v41 = vpop.f32.mrf.mxu0 }
 0x14e   : > { %v893_v42 = vpop.f32.mrf.mxu1  ;;  %v919_v44 = vpop.f32.mrf.mxu3  ;;  %v880_v53 = vadd.f32 %v879_v41, %v608_v40  ;;  %v1733_v40 = vld [vmem:[#allocation12] sm:$0xff] }
 0x14f   : > { %v920_v46 = vadd.f32 %v919_v44, %v609_v43  ;;  %v1741_v41 = vld [vmem:[#allocation12 + $0x40] sm:$0xff]  ;;  %1188 = vmatpush.bf16.msrb.mxu2 %v1733_v40 }
 0x150   : > { %v894_v57 = vadd.f32 %v893_v42, %v880_v53  ;;  %1202 = vmatpush.bf16.msrb.mxu3 %v1741_v41 }
 0x152   : > { %v907_v59 = vpop.f32.mrf.mxu2 }
 0x153   : > { %v908_v63 = vadd.f32 %v907_v59, %v894_v57 }
 0x156   : > { %v921_v55 = vpop.f32.mrf.mxu3 }
 0x157   : > { %v922_v58 = vadd.f32 %v921_v55, %v609_v43 }
 0x162   : > { %v933_v49 = vpop.f32.mrf.mxu0 }
 0x163   : > { %v934_v50 = vadd.f32 %v933_v49, %v920_v46  ;;  %v947_v51 = vpop.f32.mrf.mxu1  ;;  %v1009_v49 = vld [vmem:[%s2531_s6] sm:$0x3] }
 0x164   : > { %v1012_v55 = vperm.slane %v1009_v49, 1 }
 0x165   : > { %v948_v54 = vadd.f32 %v947_v51, %v934_v50 }
 0x167   : > { %v952_v56 = vadd.f32 %v948_v54, %v906_v52 }
 0x169   : > { %953 = vadd.xlane.f32.xlu0 %v952_v56 }
 0x16a   : > { %v935_v60 = vpop.f32.mrf.mxu0 }
 0x16b   : > { %v936_v61 = vadd.f32 %v935_v60, %v922_v58  ;;  %v949_v62 = vpop.f32.mrf.mxu1  ;;  %v1019_v58 = vld [vmem:[%s2532_s7] sm:$0x3] }
 0x16d   : > { %v950_v0 = vadd.f32 %v949_v62, %v936_v61 }
 0x16f   : > { %v955_v1 = vadd.f32 %v950_v0, %v908_v63 }
 0x171   : > { %956 = vadd.xlane.f32.xlu0 %v955_v1  ;;  %v1022_v1 = vperm.slane %v1019_v58, 1 }
 0x1dc   : > { %v954_v9 = vpop.xlane.xlu0 %953 }
 0x1dd   : > { %v965_v10 = vmul.f32 %v964_v8, %v954_v9 }
 0x1df   : > { %v2433_v11 = vsub.f32 %v906_v52, %v965_v10  ;;  %v2435_v12 = vsub.f32 %v948_v54, %v965_v10  ;;  %v1011_v54 = vperm.slane %v1009_v49, 0 }
 0x1e1   : > { %v971_v13 = vmul.f32 %v2433_v11, %v2433_v11  ;;  %v972_v14 = vmul.f32 %v2435_v12, %v2435_v12 }
 0x1e3   : > { %v975_v15 = vadd.f32 %v972_v14, %v971_v13  ;;  %v1038_v13 = vstv %s1029_s23 }
 0x1e4   : > { %v957_v16 = vpop.xlane.xlu0 %956 }
 0x1e5   : > { %v966_v17 = vmul.f32 %v964_v8, %v957_v16  ;;  %976 = vadd.xlane.f32.xlu1 %v975_v15 }
 0x1e7   : > { %v2441_v18 = vsub.f32 %v908_v63, %v966_v17  ;;  %v2443_v19 = vsub.f32 %v950_v0, %v966_v17  ;;  %v1021_v0 = vperm.slane %v1019_v58, 0 }
 0x1e9   : > { %v973_v20 = vmul.f32 %v2441_v18, %v2441_v18  ;;  %v974_v21 = vmul.f32 %v2443_v19, %v2443_v19 }
 0x1eb   : > { %v978_v22 = vadd.f32 %v974_v21, %v973_v20 }
 0x1ed   : > { %979 = vadd.xlane.f32.xlu1 %v978_v22 }
 0x258   : > { %v977_v33 = vpop.xlane.xlu1 %976 }
 0x259   : > { %v981_v34 = vmul.f32 %v977_v33, %v964_v8 }
 0x25b   : > { %v983_v37 = vadd.f32 1e-05, %v981_v34 }
 0x25d   : > { %1828 = vrsqrt.f32 %v983_v37  ;;  %vm991_vm2 = vweird.f32 %v983_v37 }
 0x260   : > { %v980_v42 = vpop.xlane.xlu1 %979 }
 0x261   : > { %v982_v43 = vmul.f32 %v980_v42, %v964_v8 }
 0x263   : > { %v1829_v44 = vpop.eup %1828  ;;  %v984_v45 = vadd.f32 1e-05, %v982_v43 }
 0x264   : > { %v986_v46 = vmul.f32 %v1829_v44, %v983_v37  ;;  %vm992_vm1 = vweird.f32 %v1829_v44 }
 0x265   : > { %1830 = vrsqrt.f32 %v984_v45  ;;  %vm993_vm3 = vmor %vm991_vm2, %vm992_vm1  ;;  %vm1001_vm5 = vweird.f32 %v984_v45 }
 0x266   : > { %v987_v47 = vmul.f32 %v1829_v44, %v986_v46 }
 0x268   : > { %v988_v48 = vmul.f32 0.5, %v987_v47 }
 0x26a   : > { %v989_v50 = vsub.f32 1.5, %v988_v48 }
 0x26b   : > { %v1831_v51 = vpop.eup %1830 }
 0x26c   : > { %v990_v52 = vmul.f32 %v1829_v44, %v989_v50  ;;  %v996_v53 = vmul.f32 %v1831_v51, %v984_v45  ;;  %vm1002_vm4 = vweird.f32 %v1831_v51 }
 0x26d   : > { %vm1003_vm6 = vmor %vm1001_vm5, %vm1002_vm4 }
 0x26e   : > { %v994_v56 = vsel %vm993_vm3, %v1829_v44, %v990_v52  ;;  %v997_v57 = vmul.f32 %v1831_v51, %v996_v53 }
 0x26f   : > { %v1005_v59 = vmul.f32 %v994_v56, %v2433_v11  ;;  %v1006_v60 = vmul.f32 %v994_v56, %v2435_v12 }
 0x270   : > { %v998_v61 = vmul.f32 0.5, %v997_v57 }
 0x271   : > { %v1015_v62 = vmul.f32 %v1011_v54, %v1005_v59  ;;  %v1016_v63 = vmul.f32 %v1012_v55, %v1006_v60 }
 0x272   : > { %v999_v2 = vsub.f32 1.5, %v998_v61 }
 0x273   : > { %v1025_v4 = vadd.f32 %v1021_v0, %v1015_v62  ;;  %v1026_v5 = vadd.f32 %v1022_v1, %v1016_v63 }
 0x274   : > { %v1000_v3 = vmul.f32 %v1831_v51, %v999_v2 }
 0x275   : > { %v1034_v11 = vmin.f32 %v1025_v4, 0.0  ;;  %v1035_v12 = vmin.f32 %v1026_v5, 0.0  ;;  %v1030_v22 = vmax.f32 %v1025_v4, 0.0  ;;  %v1031_v23 = vmax.f32 %v1026_v5, 0.0 }
 0x276   : > { %v1004_v6 = vsel %vm1003_vm6, %v1831_v51, %v1000_v3 }
 0x277   : > { %v1007_v7 = vmul.f32 %v1004_v6, %v2441_v18  ;;  %v1008_v8 = vmul.f32 %v1004_v6, %v2443_v19  ;;  %v1039_v17 = vmul.f32 %v1038_v13, %v1034_v11  ;;  %v1040_v21 = vmul.f32 %v1038_v13, %v1035_v12 }
 0x279   : > { %v1017_v9 = vmul.f32 %v1011_v54, %v1007_v7  ;;  %v1018_v10 = vmul.f32 %v1012_v55, %v1008_v8  ;;  %v1043_v27 = vadd.f32 %v1039_v17, %v1030_v22  ;;  %v1044_v28 = vadd.f32 %v1040_v21, %v1031_v23 }
 0x27b   : > { %v1027_v14 = vadd.f32 %v1021_v0, %v1017_v9  ;;  %v1028_v15 = vadd.f32 %v1022_v1, %v1018_v10 }
 0x27d   : > { %v1036_v16 = vmin.f32 %v1027_v14, 0.0  ;;  %v1037_v20 = vmin.f32 %v1028_v15, 0.0  ;;  %v1032_v24 = vmax.f32 %v1027_v14, 0.0  ;;  %v1033_v26 = vmax.f32 %v1028_v15, 0.0 }
 0x27f   : > { %v1041_v25 = vmul.f32 %v1038_v13, %v1036_v16  ;;  %v1042_v18 = vmul.f32 %v1038_v13, %v1037_v20 }
 0x281   : > { %v1045_v19 = vadd.f32 %v1041_v25, %v1032_v24  ;;  %v1046_v29 = vadd.f32 %v1042_v18, %v1033_v26 }
 0x283   : > { %v1047_v30 = vpack.c.bf16 %v1045_v19, %v1043_v27  ;;  %v1048_v31 = vpack.c.bf16 %v1046_v29, %v1044_v28 }
 0x285   : > { %1189 = vmatmul.bf16.vlgmr.msrb.gmra.mxu2 %v1047_v30  ;;  %1203 = vmatmul.bf16.vlgmr.msrb.gmra.mxu3 %v1048_v31 }
 0x308   : > { %v1190_v33 = vpop.f32.mrf.mxu2  ;;  %v1204_v34 = vpop.f32.mrf.mxu3 }
 0x309   : > { %v1191_v35 = vadd.f32 %v1825_v32, %v1190_v33 }
 0x30b   : > { %v1205_v36 = vadd.f32 %v1204_v34, %v1191_v35 }
 0x30d   : > { %1209 = vst [vmem:[%s515_s12] sm:$0xff] %v1205_v36 }
 0x310   : > { %v1192_v37 = vpop.f32.mrf.mxu2  ;;  %v1206_v39 = vpop.f32.mrf.mxu3 }
 0x311   : > { %v1193_v38 = vadd.f32 %v1825_v32, %v1192_v37  ;;  %1218 = sbr.rel (!%p2564_p6) target bundleno = 821 (0x335), region = 84 }
 0x313   : > { %v1207_v40 = vadd.f32 %v1206_v39, %v1193_v38 }
 0x315   : > { %1210 = vst [vmem:[%s515_s12 + $0x8] sm:$0xff] %v1207_v40 }
 0x316   : > { %s2582_s28 = smov (!%p1221_p10, %s1220_s28), 2 }
 0x317   : > { %s1672_s21 = sshll.u32 %s2582_s28, 3 }
 0x318   : > { %s1224_s24 = ssub.s32 16, %s1672_s21 }
 0x319   : > { %s1225_s27 = sshll.u32 %s1224_s24, 4 }
 0x31a   : > { %1226 = vsyncadd %s1212_s15, %s1225_s27  ;;  %p2472_p1 = scmp.ne.s32.totalorder %s1672_s21, 0  ;;  %s1749_s26 = sshll.u32 %s2194_s0, 4 }
 0x31b   : > { %s1229_s20 = scalar_lea.hbm %s2535_s10, %s1749_s26  ;;  %s1231_s22 = sshll.u32 %s515_s12, 4  ;;  %s2480_s22 = int_to_ptr.vmem [resolvable:$true] %s1231_s22 }
 0x31c   : > { %s1233_s14 = sshll.u32 %s1229_s20, 4  ;;  %s1676_s30 = sshll.u32 %s2582_s28, 7  ;;  %s2482_s14 = int_to_ptr.hbm [resolvable:$true] %s1233_s14 }
 0x31d   : > { %s2009_s23 = sshra.s32 %s2480_s22, 4  ;;  %s2011_s8 = sshrl.u32 %s1676_s30, 4  ;;  %s2010_s23 = int_to_ptr.vmem [resolvable:$true] %s2009_s23 }
 0x31e   : > { %s2016_s4 = scalar_lea.vmem %s2010_s23, %s2011_s8  ;;  %s2112_s0 = smov [#allocation13]  }
 0x31f   : > { %p2017_p0 = scmp.ne.s32.totalorder %s2010_s23, %s2016_s4  ;;  %s2020_s29 = scalar_lea.vmem %s2112_s0, 32 }
 0x320   : > { %p2022_p9 = scmp.lt.s32.totalorder %s2020_s29, %s2016_s4 }
 0x321   : > { %p2018_p3 = pnand %p2017_p0, %p2472_p1 }
 0x323   : > { %p2019_p8 = pneg %p2018_p3 }
 0x325   : > { %p2024_p4 = pnand %p2022_p9, %p2019_p8 }
 0x327   : > { %2027 = shalt.err (!%p2024_p4)
}
 0x328   : > { %s2028_s12 = sshra.s32 %s2482_s14, 4  ;;  %s2039_s26 = scalar_lea.hbm %s2535_s10, 24  ;;  %s2029_s12 = int_to_ptr.hbm [resolvable:$true] %s2028_s12 }
 0x329   : > { %s2035_s21 = scalar_lea.hbm %s2029_s12, %s2011_s8  ;;  %p2040_p11 = scmp.lt.s32.totalorder %s2029_s12, %s2535_s10 }
 0x32a   : > { %p2036_p12 = scmp.ne.s32.totalorder %s2029_s12, %s2035_s21  ;;  %p2041_p13 = scmp.lt.s32.totalorder %s2039_s26, %s2035_s21 }
 0x32c   : > { %p2037_p2 = pnand %p2036_p12, %p2472_p1  ;;  %p2042_p5 = por %p2041_p13, %p2040_p11 }
 0x32e   : > { %p2038_p7 = pneg %p2037_p2 }
 0x330   : > { %p2043_p6 = pnand %p2042_p5, %p2038_p7 }
 0x332   : > { %2046 = shalt.err (!%p2043_p6)
}
 0x333   : > { %s2113_s20 = smov 128   ;;  %s2114_s23 = smov 8  }
 0x334   : > { %1239 = dma.vmem_to_hbm [thread:$0]  (%p2472_p1), %s2480_s22, %s1676_s30, %s2482_s14, %s1212_s15, %s2113_s20, %s2113_s20, %s2114_s23  }
 0x335 PF: > { %s2566_s8 = sld [smem:[#allocation18_spill]]  ;;  %p2569_p0 = scmp.ge.s32.totalorder %s2094_s18, 2 }
 0x336   : > { %s2567_s4 = sld [smem:[#allocation21_spill]] }
 0x33b   : > { %s1248_s0 = sand.u32 1, %s2566_s8  }
 0x33c   : > { %p2568_p10 = scmp.ne.s32.totalorder %s2567_s4, 0  ;;  %s1249_s29 = scalar_lea.sflag [#allocation6], %s1248_s0 }
 0x33e   : > { %p1770_p3 = pnand %p2569_p0, %p2568_p10 }
 0x340   : > { %p1771_p8 = pneg %p1770_p3 }
 0x342   : > { %2077 = dma.done.wait (%p1771_p8), %s1249_s29, 256  }
 0x343   : > { %2079 = vsyncadd (%p1771_p8), %s1249_s29, 4294967040  ;;  %s2570_s18 = sld [smem:[#allocation19_spill]]  ;;  %s2572_s15 = smov %s2086_s16 }
 0x344   : > { %s2571_s19 = sld [smem:[#allocation20_spill]]  ;;  %s2573_s16 = smov %s2090_s17 }
 0x349   : > { %p28_p9 = scmp.ge.s32.totalorder %s2570_s18, 4  }
 0x34a   : > { %s2574_s17 = smov %s2571_s19 }
 0x34b   :  { %30 = sbr.rel (!%p28_p9) target bundleno = 12 (0xc), region = 137 }
 0x350   :  { %1255 = vsyncpa [#allocation5], 1 }
 0x351   :  { %1257 = vsyncpa [#allocation5 + $0x1], 1 }
 0x352   :  { %1258 = vsyncpa [#allocation8], 1 }
 0x353   :  { %1260 = vsyncpa [#allocation8 + $0x1], 1 }
 0x354   :  { %1261 = vsyncpa [#allocation11], 1 }
 0x355   :  { %1262 = vsyncpa [#allocation6], 1 }
 0x356   :  { %1264 = vsyncpa [#allocation6 + $0x1], 1 }

</bundles_post_ra>
